<compile_context>
chip_gen: v5e
topology: v5e:2x2
jax: 0.10.0
libtpu: 0.0.40
codegen_flags: <defaults>
</compile_context>

<pallas_src>
import functools

import jax
import jax.numpy as jnp
from jax import lax
from jax.experimental import pallas as pl
from jax.experimental.pallas import tpu as pltpu


_MSE_TILE_ROWS = 2048          # (2048, 128) f32 = 1 MiB / buffer; 2 inputs x 2 bufs = 4 MiB


def _pick_ce_tile(hw: int) -> int:
    for t in (8192, 4096, 2048, 1024, 512, 256, 128):
        if hw % t == 0:
            return t
    # hw not a multiple of 128: fall back to one full-row block per image.
    return hw


# --------------------------- kernels ---------------------------------------


def _mse_kernel(pred_ref, true_ref, out_ref, acc_ref, *,
                tile_rows, total_rows, needs_mask, scale):
    i = pl.program_id(0)

    @pl.when(i == 0)
    def _():
        acc_ref[0] = jnp.float32(0.0)

    d = pred_ref[...].astype(jnp.float32) - true_ref[...].astype(jnp.float32)
    if needs_mask:  # static: only the ragged-last-tile configuration pays for this
        row = lax.broadcasted_iota(jnp.int32, d.shape, 0) + i * tile_rows
        d = jnp.where(row < total_rows, d, 0.0)
    acc_ref[0] += jnp.sum(d * d)

    @pl.when(i == pl.num_programs(0) - 1)
    def _():
        out_ref[0, 0] = acc_ref[0] * jnp.float32(scale)


def _ce_kernel(logits_ref, tgt_ref, out_ref, acc_ref, *, scale):
    n = pl.program_id(0)
    j = pl.program_id(1)

    @pl.when((n == 0) & (j == 0))
    def _():
        acc_ref[0] = jnp.float32(0.0)

    logits = logits_ref[0].astype(jnp.float32)      # (K, T): classes x pixels
    tgt = tgt_ref[0]                                # (1, T) int32

    m = jnp.max(logits, axis=0, keepdims=True)                             # (1, T)
    lse = m + jnp.log(jnp.sum(jnp.exp(logits - m), axis=0, keepdims=True)) # (1, T)
    cls = lax.broadcasted_iota(jnp.int32, logits.shape, 0)                 # (K, T)
    picked = jnp.sum(jnp.where(cls == tgt, logits, 0.0),
                     axis=0, keepdims=True)                                # logit[target]
    acc_ref[0] += jnp.sum(lse - picked)

    @pl.when((n == pl.num_programs(0) - 1) & (j == pl.num_programs(1) - 1))
    def _():
        out_ref[0, 0] = acc_ref[0] * jnp.float32(scale)


# --------------------------- wrapper ----------------------------------------


def dih_loss(y_pred, y_pred_mask, y_true, y_true_mask,
             recon_loss_weight: float, pixel_loss_weight: float):
    """Equivalent of DIHLoss.forward.

    y_pred, y_true:      (N, C, H, W) float
    y_pred_mask:         (N, K, H, W) float logits
    y_true_mask:         (N, H, W)    int class indices in [0, K)
    returns scalar float32
    """
    # ---------------- MSE stream: lane-dense (rows, 128) view -----------------
    numel = int(y_pred.size)
    pred_flat = y_pred.reshape(-1)
    true_flat = y_true.reshape(-1)
    rem = numel % 128
    if rem:
        # TODO(synk): this pad copies both recon tensors once in HBM; it is only
        # hit when numel is not a multiple of 128 (untypical shapes).
        pad = 128 - rem
        pred_flat = jnp.pad(pred_flat, (0, pad))
        true_flat = jnp.pad(true_flat, (0, pad))
    rows = pred_flat.size // 128
    pred2d = pred_flat.reshape(rows, 128)
    true2d = true_flat.reshape(rows, 128)

    if rows <= _MSE_TILE_ROWS:
        tile_r, grid_r, needs_mask = rows, 1, False
    else:
        tile_r = _MSE_TILE_ROWS
        grid_r = pl.cdiv(rows, tile_r)
        needs_mask = (rows % tile_r) != 0

    mse_out = pl.pallas_call(
        functools.partial(_mse_kernel, tile_rows=tile_r, total_rows=rows,
                          needs_mask=needs_mask,
                          scale=float(recon_loss_weight) / float(numel)),
        out_shape=jax.ShapeDtypeStruct((1, 1), jnp.float32),
        grid=(grid_r,),
        in_specs=[pl.BlockSpec((tile_r, 128), lambda i: (i, 0)),
                  pl.BlockSpec((tile_r, 128), lambda i: (i, 0))],
        out_specs=pl.BlockSpec(memory_space=pltpu.MemorySpace.SMEM),
        scratch_shapes=[pltpu.SMEM((1,), jnp.float32)],
        compiler_params=pltpu.CompilerParams(
            dimension_semantics=("arbitrary",)),
    )(pred2d, true2d)

    # ---------------- CE stream: NCHW kept, classes on sublanes --------------
    N, K, H, W = y_pred_mask.shape
    hw = H * W
    num_pixels = N * hw
    logits3d = y_pred_mask.reshape(N, K, hw)                     # free reshape, no transpose
    targets3d = y_true_mask.reshape(N, 1, hw).astype(jnp.int32)  # lane-dense targets
    tile_hw = _pick_ce_tile(hw)
    grid_j = hw // tile_hw

    ce_out = pl.pallas_call(
        functools.partial(_ce_kernel,
                          scale=float(pixel_loss_weight) / float(num_pixels)),
        out_shape=jax.ShapeDtypeStruct((1, 1), jnp.float32),
        grid=(N, grid_j),
        in_specs=[pl.BlockSpec((1, K, tile_hw), lambda n, j: (n, 0, j)),
                  pl.BlockSpec((1, 1, tile_hw), lambda n, j: (n, 0, j))],
        out_specs=pl.BlockSpec(memory_space=pltpu.MemorySpace.SMEM),
        scratch_shapes=[pltpu.SMEM((1,), jnp.float32)],
        compiler_params=pltpu.CompilerParams(
            dimension_semantics=("arbitrary", "arbitrary")),
    )(logits3d, targets3d)

    return mse_out[0, 0] + ce_out[0, 0]


# --------------------------- reference & test --------------------------------


def _reference(y_pred, y_pred_mask, y_true, y_true_mask, rw, pw):
    mse = jnp.mean((y_pred - y_true) ** 2)
    N, K, H, W = y_pred_mask.shape
    logits = jnp.transpose(y_pred_mask, (0, 2, 3, 1)).reshape(-1, K)
    tgt = y_true_mask.reshape(-1)
    logp = jax.nn.log_softmax(logits, axis=-1)
    ce = -jnp.mean(jnp.take_along_axis(logp, tgt[:, None], axis=-1))
    return rw * mse + pw * ce


if __name__ == "__main__":
    key = jax.random.PRNGKey(0)
    k1, k2, k3, k4 = jax.random.split(key, 4)

    N, C, H, W = 2, 3, 16, 16   # recon images
    K = 4                       # mask classes

    y_pred = jax.random.normal(k1, (N, C, H, W), dtype=jnp.float32)
    y_true = jax.random.normal(k2, (N, C, H, W), dtype=jnp.float32)
    y_pred_mask = jax.random.normal(k3, (N, K, H, W), dtype=jnp.float32)
    y_true_mask = jax.random.randint(k4, (N, H, W), 0, K, dtype=jnp.int32)

    recon_w, pixel_w = 0.7, 1.3

    loss = dih_loss(y_pred, y_pred_mask, y_true, y_true_mask, recon_w, pixel_w)
    loss = jax.block_until_ready(loss)

    ref = _reference(y_pred, y_pred_mask, y_true, y_true_mask, recon_w, pixel_w)
    assert jnp.allclose(loss, ref, rtol=1e-5, atol=1e-5), (loss, ref)

    print("KERNEL_OK")
</pallas_src>

<mosaic_0001>
module attributes {stable_mosaic.version = 11 : i64} {
  func.func @_mse_kernel(%arg0: i32, %arg1: memref<12x128xf32, #tpu.memory_space<vmem>>, %arg2: memref<12x128xf32, #tpu.memory_space<vmem>>, %arg3: memref<1x1xf32, #tpu.memory_space<smem>>, %arg4: memref<1xf32, #tpu.memory_space<smem>>) attributes {dimension_semantics = [#tpu.dimension_semantics<arbitrary>], iteration_bounds = array<i64: 1>, scalar_prefetch = 0 : i64, scratch_operands = 1 : i64, tpu.core_type = #tpu.core_type<tc>, window_params = [{transform_indices = @transform_0, window_bounds = array<i64: 12, 128>}, {transform_indices = @transform_1, window_bounds = array<i64: 12, 128>}, {transform_indices = @transform_2, window_bounds = array<i64: 1, 1>}]} {
    %c0_i32 = arith.constant 0 : i32
    %0 = arith.cmpi eq, %arg0, %c0_i32 : i32
    %1 = arith.extui %0 : i1 to i32
    %c0_i32_0 = arith.constant 0 : i32
    %2 = arith.cmpi ne, %1, %c0_i32_0 : i32
    scf.if %2 {
      %cst_8 = arith.constant 0.000000e+00 : f32
      %c0_9 = arith.constant 0 : index
      %17 = memref.load %arg4[%c0_9] : memref<1xf32, #tpu.memory_space<smem>>
      memref.store %cst_8, %arg4[%c0_9] : memref<1xf32, #tpu.memory_space<smem>>
    } else {
    }
    %c0 = arith.constant 0 : index
    %c0_1 = arith.constant 0 : index
    %3 = vector.load %arg1[%c0, %c0_1] : memref<12x128xf32, #tpu.memory_space<vmem>>, vector<12x128xf32>
    %c0_2 = arith.constant 0 : index
    %c0_3 = arith.constant 0 : index
    %4 = vector.load %arg2[%c0_2, %c0_3] : memref<12x128xf32, #tpu.memory_space<vmem>>, vector<12x128xf32>
    %5 = arith.subf %3, %4 : vector<12x128xf32>
    %c0_4 = arith.constant 0 : index
    %6 = memref.load %arg4[%c0_4] : memref<1xf32, #tpu.memory_space<smem>>
    %7 = arith.mulf %5, %5 : vector<12x128xf32>
    %8 = vector.shape_cast %7 : vector<12x128xf32> to vector<1x12x128xf32>
    %cst = arith.constant dense<0.000000e+00> : vector<1xf32>
    %9 = vector.multi_reduction <add>, %8, %cst [1, 2] : vector<1x12x128xf32> to vector<1xf32>
    %10 = vector.shape_cast %9 : vector<1xf32> to vector<1x1x1xf32>
    %11 = vector.extract %10[0, 0, 0] : f32 from vector<1x1x1xf32>
    %12 = arith.addf %6, %11 : f32
    %c0_5 = arith.constant 0 : index
    %13 = memref.load %arg4[%c0_5] : memref<1xf32, #tpu.memory_space<smem>>
    memref.store %12, %arg4[%c0_5] : memref<1xf32, #tpu.memory_space<smem>>
    %c0_i32_6 = arith.constant 0 : i32
    %14 = arith.cmpi eq, %arg0, %c0_i32_6 : i32
    %15 = arith.extui %14 : i1 to i32
    %c0_i32_7 = arith.constant 0 : i32
    %16 = arith.cmpi ne, %15, %c0_i32_7 : i32
    scf.if %16 {
      %c0_8 = arith.constant 0 : index
      %17 = memref.load %arg4[%c0_8] : memref<1xf32, #tpu.memory_space<smem>>
      %cst_9 = arith.constant 4.55729169E-4 : f32
      %18 = arith.mulf %17, %cst_9 : f32
      %c0_10 = arith.constant 0 : index
      %c0_11 = arith.constant 0 : index
      %19 = memref.load %arg3[%c0_10, %c0_11] : memref<1x1xf32, #tpu.memory_space<smem>>
      memref.store %18, %arg3[%c0_10, %c0_11] : memref<1x1xf32, #tpu.memory_space<smem>>
    } else {
    }
    return
  }
  func.func @transform_0(%arg0: i32) -> (i32, i32) {
    %c0_i32 = arith.constant 0 : i32
    %c0_i32_0 = arith.constant 0 : i32
    return %arg0, %c0_i32 : i32, i32
  }
  func.func @transform_1(%arg0: i32) -> (i32, i32) {
    %c0_i32 = arith.constant 0 : i32
    %c0_i32_0 = arith.constant 0 : i32
    return %arg0, %c0_i32 : i32, i32
  }
  func.func @transform_2(%arg0: i32) -> (i32, i32) {
    %c0_i32 = arith.constant 0 : i32
    %c0_i32_0 = arith.constant 0 : i32
    %c0_i32_1 = arith.constant 0 : i32
    return %c0_i32, %c0_i32_0 : i32, i32
  }
}

</mosaic_0001>

<bundles_post_ra>
// kernel: tpu_custom_call.1
= control target key start
LH: loop header
LB: loop body
LE: loop exit
PB: predicated region body
PF: predicated region fallthrough
CT: control target
= control target key end

     0   :  { %7 = vsyncpa [#allocation4], 0  ;;  %s200_s0 = inlined_call_operand.hbm [shape: f32[12,128], index: 0, kind: input, shape index: {}]   ;;  %s201_s1 = inlined_call_operand.hbm [shape: f32[12,128], index: 1, kind: input, shape index: {}]   ;;  %s202_s2 = inlined_call_operand.hbm [shape: f32[1,1], index: 2, kind: output, shape index: {}]  }
   0x1   :  { %8 = vsyncpa [#allocation7], 0 }
   0x2   :  { %9 = vsyncpa [#allocation5], 0  ;;  %s14_s11 = sshll.u32 %s200_s0, 4  ;;  %s171_s12 = smov [#allocation3]   ;;  %s15_s11 = int_to_ptr.hbm [resolvable:$true] %s14_s11 }
   0x3   :  { %s16_s13 = sshll.u32 %s171_s12, 4  ;;  %s27_s16 = sshll.u32 %s201_s1, 4  ;;  %s17_s13 = int_to_ptr.vmem [resolvable:$true] %s16_s13  ;;  %s28_s16 = int_to_ptr.hbm [resolvable:$true] %s27_s16 }
   0x4   :  { %s172_s17 = smov 128   ;;  %s173_s18 = smov 8  }
   0x5   :  { %22 = dma.hbm_to_vmem [thread:$0]  %s15_s11, 256, %s17_s13, [#allocation4], %s172_s17, %s172_s17, %s173_s18  }
   0x6   :  { %s174_s19 = smov [#allocation6]  }
   0x7   :  { %s29_s20 = sshll.u32 %s174_s19, 4  ;;  %s30_s20 = int_to_ptr.vmem [resolvable:$true] %s29_s20 }
   0x8   :  { %35 = dma.hbm_to_vmem [thread:$0]  %s28_s16, 256, %s30_s20, [#allocation7], %s172_s17, %s172_s17, %s173_s18  }
   0x9   :  { %165 = dma.done.wait [#allocation4], 256  }
   0xa   :  { %166 = vsyncadd [#allocation4], 4294967040 }
   0xb   :  { %167 = dma.done.wait [#allocation7], 256  }
   0xc   :  { %168 = vsyncadd [#allocation7], 4294967040  ;;  %v50_v0 = vld [vmem:[#allocation3] sm:$0xff]  ;;  %v51_v1 = vld [vmem:[#allocation3 + $0x8] sm:$0xf]  ;;  %vm59_vm0 = vcmask 1043456  }
   0xd   :  { %v52_v2 = vld [vmem:[#allocation6] sm:$0xff]  ;;  %v53_v3 = vld [vmem:[#allocation6 + $0x8] sm:$0xf]  ;;  %s86_s21 = sshll.u32 %s202_s2, 4  ;;  %s175_s24 = smov [#allocation8]   ;;  %s87_s21 = int_to_ptr.hbm [resolvable:$true] %s86_s21 }
   0xe   :  { %v54_v4 = vsub.f32 %v50_v0, %v52_v2  ;;  %v55_v5 = vsub.f32 %v51_v1, %v53_v3 }
  0x10   :  { %v57_v6 = vmul.f32 %v54_v4, %v54_v4  ;;  %v58_v7 = vmul.f32 %v55_v5, %v55_v5 }
  0x12   :  { %v60_v8 = vsel %vm59_vm0, %v58_v7, 0.0 }
  0x13   :  { %v61_v9 = vadd.f32 %v60_v8, %v57_v6 }
  0x15   :  { %62 = vadd.xlane.f32.xlu0 %v61_v9 }
  0x88   :  { %v63_v10 = vpop.xlane.xlu0 %62 }
  0x89   :  { %v64_v11 = vrot.slane %v63_v10, 4 }
  0x8b   :  { %v65_v12 = vadd.f32 %v64_v11, %v63_v10 }
  0x8d   :  { %v66_v13 = vrot.slane %v65_v12, 2 }
  0x8f   :  { %v67_v14 = vadd.f32 %v66_v13, %v65_v12 }
  0x91   :  { %v68_v15 = vrot.slane %v67_v14, 1 }
  0x93   :  { %v69_v16 = vadd.f32 %v68_v15, %v67_v14 }
  0x95   :  { %98 = vpush %v69_v16 }
  0xc6   :  { %s99_s22 = spop %98 }
  0xc7   :  { %s78_s23 = smul.f32 0.00045572917, %s99_s22 }
  0xc9   :  { %80 = sst [smem:[#allocation8]] %s78_s23 }
  0xca   :  { %89 = dma.smem_to_hbm %s175_s24, 16, %s87_s21, [#allocation5]  }
  0xcb   :  { %169 = dma.done.wait [#allocation5], 16  }
  0xcc   :  { %170 = vsyncadd [#allocation5], 4294967280 }
  0xcd   :  { %94 = sfence }
  0xce   :  { %95 = vsyncpa [#allocation4], 1 }
  0xcf   :  { %96 = vsyncpa [#allocation7], 1 }
  0xd0   :  { %97 = vsyncpa [#allocation5], 1 }

</bundles_post_ra>
